<compile_context>
chip_gen: v6e
topology: v6e:2x2x1
jax: 0.10.0
libtpu: 0.0.40
codegen_flags: <defaults>
</compile_context>

<pallas_src>
import jax
import jax.numpy as jnp
from jax.experimental import pallas as pl
from jax.experimental.pallas import tpu as pltpu


def _round_up(x, m):
    return ((x + m - 1) // m) * m


def _vmem_budget_bytes():
    """~75% of physical VMEM: 48 MiB on v7x, 96 MiB on v5e/v6e. Leaves headroom for
    compiler internal scratch instead of pinning the limit to the physical size."""
    try:
        cap = int(pltpu.get_tpu_info().vmem_capacity_bytes)
    except Exception:
        cap = 64 << 20                      # assume the smallest (v7x per-TC) if query fails
    return (cap * 3) // 4


def _resident_vmem_bytes(tm, D, F, x_it, w_it, out_it):
    weights = 2 * (D * F + F * D) * w_it    # conservatively assume double-buffered
    acts = 2 * tm * D * (x_it + out_it)     # double-buffered x block + out block
    interm = tm * F * 4 + 2 * tm * D * 4    # h (f32) + LN/residual temporaries
    small = 4 * (2 * F + 4 * D)
    return weights + acts + interm + small


def _ftiled_vmem_bytes(tm, tf, D, x_it, w_it, out_it):
    weights = 2 * (D * tf + tf * D) * w_it
    acts = 2 * tm * D * (x_it + out_it)
    scratch = tm * D * (w_it + 4)           # cached xn + f32 output accumulator
    interm = tm * tf * 4 + tm * D * 4
    small = 4 * (2 * tf + 4 * D)
    return weights + acts + scratch + interm + small


# --------------------------------------------------------------------------------------
# Kernel A: weights resident in VMEM (single F step per row tile).
# --------------------------------------------------------------------------------------
def _ffn_kernel_resident(x_ref, gamma_ref, beta_ref, w1_ref, b1_ref, w2_ref, b2_ref,
                         out_ref):
    # ---- LayerNorm(d_model, eps=1e-6), stats in f32 ----
    x = x_ref[...].astype(jnp.float32)
    mean = jnp.mean(x, axis=-1, keepdims=True)
    xc = x - mean
    var = jnp.mean(xc * xc, axis=-1, keepdims=True)        # biased, matches torch LayerNorm
    xn = xc * jax.lax.rsqrt(var + 1e-6)
    xn = xn * gamma_ref[...].astype(jnp.float32) + beta_ref[...].astype(jnp.float32)

    # ---- w_1: (tm, D) @ (D, F) on the MXU, f32 accumulate; ReLU (dropout_1 p=0) ----
    h = jnp.dot(xn.astype(w1_ref.dtype), w1_ref[...], preferred_element_type=jnp.float32)
    h = jnp.maximum(h + b1_ref[...].astype(jnp.float32), 0.0)

    # ---- w_2: (tm, F) @ (F, D); bias2 + residual (dropout_2 p=0), single downcast ----
    y = jnp.dot(h.astype(w2_ref.dtype), w2_ref[...], preferred_element_type=jnp.float32)
    y = y + b2_ref[...].astype(jnp.float32)
    out_ref[...] = (y + x).astype(out_ref.dtype)


# --------------------------------------------------------------------------------------
# Kernel B: hidden dim streamed in F tiles; LayerNorm hoisted into a cached xn scratch.
# --------------------------------------------------------------------------------------
def _ffn_kernel_ftiled(x_ref, gamma_ref, beta_ref, w1_ref, b1_ref, w2_ref, b2_ref,
                       out_ref, xn_ref, acc_ref):
    j = pl.program_id(1)

    @pl.when(j == 0)
    def _():
        # LayerNorm hoisted out of the F loop: computed once per row tile, cached in VMEM
        # already cast to the matmul (weight) dtype.
        x = x_ref[...].astype(jnp.float32)
        mean = jnp.mean(x, axis=-1, keepdims=True)
        xc = x - mean
        var = jnp.mean(xc * xc, axis=-1, keepdims=True)
        xn = xc * jax.lax.rsqrt(var + 1e-6)
        xn = xn * gamma_ref[...].astype(jnp.float32) + beta_ref[...].astype(jnp.float32)
        xn_ref[...] = xn.astype(xn_ref.dtype)
        acc_ref[...] = jnp.zeros_like(acc_ref)

    # ---- w_1 column-block: (tm, D) @ (D, tf), f32 accumulate; ReLU ----
    h = jnp.dot(xn_ref[...], w1_ref[...], preferred_element_type=jnp.float32)
    h = jnp.maximum(h + b1_ref[...].astype(jnp.float32), 0.0)

    # ---- w_2 row-block: (tm, tf) @ (tf, D), accumulate partial output in f32 ----
    acc_ref[...] += jnp.dot(h.astype(w2_ref.dtype), w2_ref[...],
                            preferred_element_type=jnp.float32)

    # ---- finalize on last hidden tile: bias2 + residual, single downcast ----
    @pl.when(j == pl.num_programs(1) - 1)
    def _():
        y = acc_ref[...] + b2_ref[...].astype(jnp.float32)
        out_ref[...] = (y + x_ref[...].astype(jnp.float32)).astype(out_ref.dtype)


# --------------------------------------------------------------------------------------
# Wrapper
# --------------------------------------------------------------------------------------
def positionwise_feed_forward(x, gamma, beta, w1, b1, w2, b2, *,
                              row_tile=None, f_tile=None, vmem_budget=None,
                              weights_resident=None):
    """x: (batch, seq, d_model). Weights stored as (in, out) so the kernel does x @ W.
    Pass bf16 w1/w2 for full-rate MXU on v6e/v7x; accumulation is always f32."""
    B, S, D = x.shape
    F = w1.shape[1]
    M = B * S
    x2 = x.reshape(M, D)

    x_it = jnp.dtype(x.dtype).itemsize
    out_it = x_it
    w_it = jnp.dtype(w1.dtype).itemsize

    if vmem_budget is None:
        vmem_budget = _vmem_budget_bytes()
    vmem_budget = int(vmem_budget)

    # -------- row-tile candidates (multiple of 8, megacore-friendly) --------
    M8 = _round_up(max(M, 1), 8)

    def _clip_tm(t):
        t = min(_round_up(max(t, 8), 8), M8)
        # If one tile would swallow all rows but rows are plentiful, halve the tile so
        # the 'parallel' rows axis has >= 2 blocks and can occupy both TensorCores.
        if t >= M8 and M8 >= 256:
            t = _round_up((M8 + 1) // 2, 8)
        return t

    if row_tile is not None:
        tm_cands = [_clip_tm(row_tile)]
    else:
        tm_cands = sorted({_clip_tm(t) for t in (1024, 768, 512, 384, 256, 128)},
                          reverse=True)

    # -------- choose path: weight-resident vs. F-streamed --------
    res_tm = None
    for t in tm_cands:
        if _resident_vmem_bytes(t, D, F, x_it, w_it, out_it) <= vmem_budget:
            res_tm = t
            break
    if weights_resident is None:
        weights_resident = res_tm is not None
    if weights_resident and res_tm is None:
        res_tm = tm_cands[-1]          # user forced residency; best effort

    if weights_resident:
        tm = res_tm
        M_pad = _round_up(M, tm)
        if M_pad != M:
            x2 = jnp.pad(x2, ((0, M_pad - M), (0, 0)))
        n_row_blocks = M_pad // tm

        cost = pl.CostEstimate(
            flops=4 * M_pad * D * F,
            transcendentals=M_pad,
            bytes_accessed=(2 * M_pad * D * x_it
                            + (w1.size + w2.size) * w_it              # weights read once
                            + (b1.size + b2.size + gamma.size + beta.size) * 4),
        )

        out2 = pl.pallas_call(
            _ffn_kernel_resident,
            out_shape=jax.ShapeDtypeStruct((M_pad, D), x.dtype),
            grid_spec=pltpu.PrefetchScalarGridSpec(
                num_scalar_prefetch=0,
                grid=(n_row_blocks,),
                in_specs=[
                    pl.BlockSpec((tm, D), lambda i: (i, 0)),   # x rows
                    pl.BlockSpec((1, D), lambda i: (0, 0)),    # gamma (constant -> 1 DMA)
                    pl.BlockSpec((1, D), lambda i: (0, 0)),    # beta
                    pl.BlockSpec((D, F), lambda i: (0, 0)),    # w1 (VMEM-resident)
                    pl.BlockSpec((1, F), lambda i: (0, 0)),    # b1
                    pl.BlockSpec((F, D), lambda i: (0, 0)),    # w2 (VMEM-resident)
                    pl.BlockSpec((1, D), lambda i: (0, 0)),    # b2
                ],
                out_specs=pl.BlockSpec((tm, D), lambda i: (i, 0)),
            ),
            compiler_params=pltpu.CompilerParams(
                dimension_semantics=("parallel",),
                vmem_limit_bytes=vmem_budget,
            ),
            cost_estimate=cost,
        )(x2, gamma, beta, w1, b1, w2, b2)

    else:
        # -------- F-streamed fallback: pick (tm, tf) that fit the VMEM budget --------
        if f_tile is not None:
            tf_cands = [min(f_tile, F)]
            if F % tf_cands[0] != 0:
                tf_cands = [F]
        else:
            tf_cands = [c for c in (1024, 512, 256, 128) if c <= F and F % c == 0]
            if not tf_cands:
                tf_cands = [F]

        chosen = None
        for t in tm_cands:
            for tf_c in tf_cands:
                if _ftiled_vmem_bytes(t, tf_c, D, x_it, w_it, out_it) <= vmem_budget:
                    chosen = (t, tf_c)
                    break
            if chosen is not None:
                break
        if chosen is None:
            chosen = (tm_cands[-1], tf_cands[-1])
        tm, tf = chosen

        M_pad = _round_up(M, tm)
        if M_pad != M:
            x2 = jnp.pad(x2, ((0, M_pad - M), (0, 0)))
        n_row_blocks = M_pad // tm
        grid = (n_row_blocks, F // tf)

        cost = pl.CostEstimate(
            flops=4 * M_pad * D * F,
            transcendentals=M_pad,
            bytes_accessed=(2 * M_pad * D * x_it
                            # weights (and b1) are re-streamed once per row block:
                            + n_row_blocks * (w1.size + w2.size + b1.size) * w_it
                            + (b2.size + gamma.size + beta.size) * 4),
        )

        out2 = pl.pallas_call(
            _ffn_kernel_ftiled,
            out_shape=jax.ShapeDtypeStruct((M_pad, D), x.dtype),
            grid_spec=pltpu.PrefetchScalarGridSpec(
                num_scalar_prefetch=0,
                grid=grid,
                in_specs=[
                    pl.BlockSpec((tm, D), lambda i, j: (i, 0)),   # x rows (resident across F)
                    pl.BlockSpec((1, D), lambda i, j: (0, 0)),    # gamma
                    pl.BlockSpec((1, D), lambda i, j: (0, 0)),    # beta
                    pl.BlockSpec((D, tf), lambda i, j: (0, j)),   # w1 column-block
                    pl.BlockSpec((1, tf), lambda i, j: (0, j)),   # b1 block
                    pl.BlockSpec((tf, D), lambda i, j: (j, 0)),   # w2 row-block
                    pl.BlockSpec((1, D), lambda i, j: (0, 0)),    # b2
                ],
                out_specs=pl.BlockSpec((tm, D), lambda i, j: (i, 0)),
                scratch_shapes=[
                    pltpu.VMEM((tm, D), w1.dtype),      # cached LayerNorm output (hoisted)
                    pltpu.VMEM((tm, D), jnp.float32),   # f32 output accumulator
                ],
            ),
            compiler_params=pltpu.CompilerParams(
                dimension_semantics=("parallel", "arbitrary"),
                vmem_limit_bytes=vmem_budget,
            ),
            cost_estimate=cost,
        )(x2, gamma, beta, w1, b1, w2, b2)

    if M_pad != M:
        out2 = out2[:M]
    return out2.reshape(B, S, D)


def _reference(x, gamma, beta, w1, b1, w2, b2):
    """Pure-JAX reference mirroring the kernel's dtype policy (matmuls in weight dtype)."""
    xf = x.astype(jnp.float32)
    mean = jnp.mean(xf, axis=-1, keepdims=True)
    var = jnp.mean((xf - mean) ** 2, axis=-1, keepdims=True)
    xn = (xf - mean) * jax.lax.rsqrt(var + 1e-6)
    xn = xn * gamma[0].astype(jnp.float32) + beta[0].astype(jnp.float32)
    h = jnp.dot(xn.astype(w1.dtype), w1, preferred_element_type=jnp.float32)
    h = jnp.maximum(h + b1[0].astype(jnp.float32), 0.0)
    y = jnp.dot(h.astype(w2.dtype), w2, preferred_element_type=jnp.float32)
    y = y + b2[0].astype(jnp.float32)
    return (y + xf).astype(x.dtype)


if __name__ == "__main__":
    # Small but lane-dense shapes: (batch, seq, d_model) with d_model/d_ff multiples of 128.
    batch, seq, d_model, d_ff = 2, 8, 128, 256

    key = jax.random.PRNGKey(0)
    kx, k1, k2, k3, k4 = jax.random.split(key, 5)

    x = jax.random.normal(kx, (batch, seq, d_model), dtype=jnp.float32)

    lim1 = 1.0 / (d_model ** 0.5)
    lim2 = 1.0 / (d_ff ** 0.5)
    w1 = jax.random.uniform(k1, (d_model, d_ff), minval=-lim1, maxval=lim1, dtype=jnp.float32)
    b1 = jax.random.uniform(k2, (1, d_ff), minval=-lim1, maxval=lim1, dtype=jnp.float32)
    w2 = jax.random.uniform(k3, (d_ff, d_model), minval=-lim2, maxval=lim2, dtype=jnp.float32)
    b2 = jax.random.uniform(k4, (1, d_model), minval=-lim2, maxval=lim2, dtype=jnp.float32)
    gamma = jnp.ones((1, d_model), dtype=jnp.float32)   # LayerNorm weight init
    beta = jnp.zeros((1, d_model), dtype=jnp.float32)   # LayerNorm bias init

    ref = _reference(x, gamma, beta, w1, b1, w2, b2)

    # 1) Auto path (weights fit VMEM -> resident-weight kernel), f32 weights.
    out = jax.block_until_ready(positionwise_feed_forward(x, gamma, beta, w1, b1, w2, b2))
    assert out.shape == (batch, seq, d_model)
    assert jnp.allclose(out, ref, atol=1e-4, rtol=1e-4), "resident f32 path mismatch"

    # 2) Forced F-streamed path (exercises hoisted-LN + accumulator kernel, 2 F steps).
    out_s = jax.block_until_ready(
        positionwise_feed_forward(x, gamma, beta, w1, b1, w2, b2,
                                  weights_resident=False, f_tile=128))
    assert jnp.allclose(out_s, ref, atol=1e-4, rtol=1e-4), "streamed f32 path mismatch"

    # 3) bf16-weight path (production MXU config: bf16 operands, f32 accumulation).
    w1b = w1.astype(jnp.bfloat16)
    w2b = w2.astype(jnp.bfloat16)
    ref_bf = _reference(x, gamma, beta, w1b, b1, w2b, b2)
    out_bf = jax.block_until_ready(
        positionwise_feed_forward(x, gamma, beta, w1b, b1, w2b, b2))
    assert jnp.allclose(out_bf, ref_bf, atol=2e-2, rtol=2e-2), "resident bf16 path mismatch"
    out_bf_s = jax.block_until_ready(
        positionwise_feed_forward(x, gamma, beta, w1b, b1, w2b, b2,
                                  weights_resident=False, f_tile=128))
    assert jnp.allclose(out_bf_s, ref_bf, atol=2e-2, rtol=2e-2), "streamed bf16 path mismatch"

    print("KERNEL_OK")
</pallas_src>

<mosaic_0001>
module attributes {stable_mosaic.version = 11 : i64} {
  func.func @_ffn_kernel_resident(%arg0: i32, %arg1: memref<16x128xf32, #tpu.memory_space<vmem>>, %arg2: memref<1x128xf32, #tpu.memory_space<vmem>>, %arg3: memref<1x128xf32, #tpu.memory_space<vmem>>, %arg4: memref<128x256xf32, #tpu.memory_space<vmem>>, %arg5: memref<1x256xf32, #tpu.memory_space<vmem>>, %arg6: memref<256x128xf32, #tpu.memory_space<vmem>>, %arg7: memref<1x128xf32, #tpu.memory_space<vmem>>, %arg8: memref<16x128xf32, #tpu.memory_space<vmem>>) attributes {dimension_semantics = [#tpu.dimension_semantics<parallel>], iteration_bounds = array<i64: 1>, scalar_prefetch = 0 : i64, scratch_operands = 0 : i64, tpu.core_type = #tpu.core_type<tc>, window_params = [{transform_indices = @transform_0, window_bounds = array<i64: 16, 128>}, {pipeline_mode = #tpu.pipeline_mode<synchronous>, transform_indices = @transform_1, window_bounds = array<i64: 1, 128>}, {pipeline_mode = #tpu.pipeline_mode<synchronous>, transform_indices = @transform_2, window_bounds = array<i64: 1, 128>}, {pipeline_mode = #tpu.pipeline_mode<synchronous>, transform_indices = @transform_3, window_bounds = array<i64: 128, 256>}, {pipeline_mode = #tpu.pipeline_mode<synchronous>, transform_indices = @transform_4, window_bounds = array<i64: 1, 256>}, {pipeline_mode = #tpu.pipeline_mode<synchronous>, transform_indices = @transform_5, window_bounds = array<i64: 256, 128>}, {pipeline_mode = #tpu.pipeline_mode<synchronous>, transform_indices = @transform_6, window_bounds = array<i64: 1, 128>}, {transform_indices = @transform_7, window_bounds = array<i64: 16, 128>}]} {
    %c0 = arith.constant 0 : index
    %c0_0 = arith.constant 0 : index
    %0 = vector.load %arg1[%c0, %c0_0] : memref<16x128xf32, #tpu.memory_space<vmem>>, vector<16x128xf32>
    %cst = arith.constant dense<0.000000e+00> : vector<16xf32>
    %1 = vector.multi_reduction <add>, %0, %cst [1] : vector<16x128xf32> to vector<16xf32>
    %2 = vector.shape_cast %1 : vector<16xf32> to vector<16x1xf32>
    %cst_1 = arith.constant 1.280000e+02 : f32
    %3 = vector.broadcast %cst_1 : f32 to vector<16x1xf32>
    %4 = arith.divf %2, %3 : vector<16x1xf32>
    %5 = vector.broadcast %4 : vector<16x1xf32> to vector<16x128xf32>
    %6 = arith.subf %0, %5 : vector<16x128xf32>
    %7 = arith.mulf %6, %6 : vector<16x128xf32>
    %cst_2 = arith.constant dense<0.000000e+00> : vector<16xf32>
    %8 = vector.multi_reduction <add>, %7, %cst_2 [1] : vector<16x128xf32> to vector<16xf32>
    %9 = vector.shape_cast %8 : vector<16xf32> to vector<16x1xf32>
    %cst_3 = arith.constant 1.280000e+02 : f32
    %10 = vector.broadcast %cst_3 : f32 to vector<16x1xf32>
    %11 = arith.divf %9, %10 : vector<16x1xf32>
    %cst_4 = arith.constant 9.99999997E-7 : f32
    %12 = vector.broadcast %cst_4 : f32 to vector<16x1xf32>
    %13 = arith.addf %11, %12 : vector<16x1xf32>
    %14 = math.rsqrt %13 : vector<16x1xf32>
    %15 = vector.broadcast %14 : vector<16x1xf32> to vector<16x128xf32>
    %16 = arith.mulf %6, %15 : vector<16x128xf32>
    %c0_5 = arith.constant 0 : index
    %c0_6 = arith.constant 0 : index
    %17 = vector.load %arg2[%c0_5, %c0_6] : memref<1x128xf32, #tpu.memory_space<vmem>>, vector<1x128xf32>
    %18 = vector.broadcast %17 : vector<1x128xf32> to vector<16x128xf32>
    %19 = arith.mulf %16, %18 : vector<16x128xf32>
    %c0_7 = arith.constant 0 : index
    %c0_8 = arith.constant 0 : index
    %20 = vector.load %arg3[%c0_7, %c0_8] : memref<1x128xf32, #tpu.memory_space<vmem>>, vector<1x128xf32>
    %21 = vector.broadcast %20 : vector<1x128xf32> to vector<16x128xf32>
    %22 = arith.addf %19, %21 : vector<16x128xf32>
    %c0_9 = arith.constant 0 : index
    %c0_10 = arith.constant 0 : index
    %23 = vector.load %arg4[%c0_9, %c0_10] : memref<128x256xf32, #tpu.memory_space<vmem>>, vector<128x256xf32>
    %cst_11 = arith.constant dense<0.000000e+00> : vector<16x256xf32>
    %24 = tpu.matmul %22, %23, %cst_11 {dimension_numbers = #tpu.dot_dimension_numbers<[1], [0], [0], [1], [0, 0, 1, 1], [], []>} : vector<16x128xf32>, vector<128x256xf32>, vector<16x256xf32> -> vector<16x256xf32>
    %c0_12 = arith.constant 0 : index
    %c0_13 = arith.constant 0 : index
    %25 = vector.load %arg5[%c0_12, %c0_13] : memref<1x256xf32, #tpu.memory_space<vmem>>, vector<1x256xf32>
    %26 = vector.broadcast %25 : vector<1x256xf32> to vector<16x256xf32>
    %27 = arith.addf %24, %26 : vector<16x256xf32>
    %cst_14 = arith.constant 0.000000e+00 : f32
    %28 = vector.broadcast %cst_14 : f32 to vector<16x256xf32>
    %29 = arith.maximumf %27, %28 : vector<16x256xf32>
    %c0_15 = arith.constant 0 : index
    %c0_16 = arith.constant 0 : index
    %30 = vector.load %arg6[%c0_15, %c0_16] : memref<256x128xf32, #tpu.memory_space<vmem>>, vector<256x128xf32>
    %cst_17 = arith.constant dense<0.000000e+00> : vector<16x128xf32>
    %31 = tpu.matmul %29, %30, %cst_17 {dimension_numbers = #tpu.dot_dimension_numbers<[1], [0], [0], [1], [0, 0, 1, 1], [], []>} : vector<16x256xf32>, vector<256x128xf32>, vector<16x128xf32> -> vector<16x128xf32>
    %c0_18 = arith.constant 0 : index
    %c0_19 = arith.constant 0 : index
    %32 = vector.load %arg7[%c0_18, %c0_19] : memref<1x128xf32, #tpu.memory_space<vmem>>, vector<1x128xf32>
    %33 = vector.broadcast %32 : vector<1x128xf32> to vector<16x128xf32>
    %34 = arith.addf %31, %33 : vector<16x128xf32>
    %35 = arith.addf %34, %0 : vector<16x128xf32>
    %c0_20 = arith.constant 0 : index
    %c0_21 = arith.constant 0 : index
    %36 = vector.load %arg8[%c0_20, %c0_21] : memref<16x128xf32, #tpu.memory_space<vmem>>, vector<16x128xf32>
    tpu.vector_store %arg8[%c0_20, %c0_21], %35 {strides = array<i32>} : memref<16x128xf32, #tpu.memory_space<vmem>>, vector<16x128xf32>,
    return
  }
  func.func @transform_0(%arg0: i32) -> (i32, i32) {
    %c0_i32 = arith.constant 0 : i32
    %c0_i32_0 = arith.constant 0 : i32
    return %arg0, %c0_i32 : i32, i32
  }
  func.func @transform_1(%arg0: i32) -> (i32, i32) {
    %c0_i32 = arith.constant 0 : i32
    %c0_i32_0 = arith.constant 0 : i32
    %c0_i32_1 = arith.constant 0 : i32
    return %c0_i32, %c0_i32_0 : i32, i32
  }
  func.func @transform_2(%arg0: i32) -> (i32, i32) {
    %c0_i32 = arith.constant 0 : i32
    %c0_i32_0 = arith.constant 0 : i32
    %c0_i32_1 = arith.constant 0 : i32
    return %c0_i32, %c0_i32_0 : i32, i32
  }
  func.func @transform_3(%arg0: i32) -> (i32, i32) {
    %c0_i32 = arith.constant 0 : i32
    %c0_i32_0 = arith.constant 0 : i32
    %c0_i32_1 = arith.constant 0 : i32
    return %c0_i32, %c0_i32_0 : i32, i32
  }
  func.func @transform_4(%arg0: i32) -> (i32, i32) {
    %c0_i32 = arith.constant 0 : i32
    %c0_i32_0 = arith.constant 0 : i32
    %c0_i32_1 = arith.constant 0 : i32
    return %c0_i32, %c0_i32_0 : i32, i32
  }
  func.func @transform_5(%arg0: i32) -> (i32, i32) {
    %c0_i32 = arith.constant 0 : i32
    %c0_i32_0 = arith.constant 0 : i32
    %c0_i32_1 = arith.constant 0 : i32
    return %c0_i32, %c0_i32_0 : i32, i32
  }
  func.func @transform_6(%arg0: i32) -> (i32, i32) {
    %c0_i32 = arith.constant 0 : i32
    %c0_i32_0 = arith.constant 0 : i32
    %c0_i32_1 = arith.constant 0 : i32
    return %c0_i32, %c0_i32_0 : i32, i32
  }
  func.func @transform_7(%arg0: i32) -> (i32, i32) {
    %c0_i32 = arith.constant 0 : i32
    %c0_i32_0 = arith.constant 0 : i32
    return %arg0, %c0_i32 : i32, i32
  }
}

</mosaic_0001>

<bundles_post_ra>
// kernel: tpu_custom_call.1
= control target key start
LH: loop header
LB: loop body
LE: loop exit
PB: predicated region body
PF: predicated region fallthrough
CT: control target
= control target key end

     0   :  { %12 = vsyncpa [#allocation3], 0  ;;  %s653_s0 = inlined_call_operand.hbm [shape: f32[16,128], index: 0, kind: input, shape index: {}]   ;;  %s654_s1 = inlined_call_operand.vmem [shape: f32[1,128], index: 1, kind: input, shape index: {}]   ;;  %s655_s2 = inlined_call_operand.hbm [shape: f32[1,128], index: 2, kind: input, shape index: {}]   ;;  %s656_s3 = inlined_call_operand.hbm [shape: f32[128,256], index: 3, kind: input, shape index: {}]   ;;  %s657_s4 = inlined_call_operand.vmem [shape: f32[1,256], index: 4, kind: input, shape index: {}]   ;;  %s658_s5 = inlined_call_operand.hbm [shape: f32[256,128], index: 5, kind: input, shape index: {}]   ;;  %s659_s6 = inlined_call_operand.vmem [shape: f32[1,128], index: 6, kind: input, shape index: {}]   ;;  %s660_s7 = inlined_call_operand.hbm [shape: f32[16,128], index: 7, kind: output, shape index: {}]  }
   0x1   :  { %13 = vsyncpa [#allocation6], 0 }
   0x2   :  { %14 = vsyncpa [#allocation9], 0 }
   0x3   :  { %15 = vsyncpa [#allocation4], 0  ;;  %s548_s24 = smov [#allocation5]   ;;  %s549_s26 = smov [#allocation2]  }
   0x4   :  { %s36_s25 = sshll.u32 %s548_s24, 4  ;;  %s21_s27 = sshll.u32 %s549_s26, 4  ;;  %s37_s25 = int_to_ptr.vmem [resolvable:$true] %s36_s25  ;;  %s22_s27 = int_to_ptr.vmem [resolvable:$true] %s21_s27 }
   0x5   :  { %s448_s28 = scalar_lea.vmem %s37_s25, 16  ;;  %s452_s29 = scalar_lea.vmem %s37_s25, 32 }
   0x6   :  { %p449_p0 = scmp.ne.s32.totalorder %s37_s25, %s448_s28  ;;  %p453_p1 = scmp.lt.s32.totalorder %s37_s25, %s37_s25 }
   0x7   :  { %p454_p2 = scmp.lt.s32.totalorder %s452_s29, %s448_s28 }
   0x9   :  { %p455_p3 = por %p454_p2, %p453_p1 }
   0xb   :  { %p456_p4 = pnand %p455_p3, %p449_p0 }
   0xd   :  { %459 = shalt.err (!%p456_p4)
}
   0xe   :  { %39 = dma.hbm_to_vmem [thread:$0]  %s655_s2, 16, %s37_s25, [#allocation6]  }
   0xf   :  { %s468_s9 = scalar_lea.vmem %s22_s27, 256  ;;  %p473_p6 = scmp.lt.s32.totalorder %s22_s27, %s22_s27 }
  0x10   :  { %p469_p5 = scmp.ne.s32.totalorder %s22_s27, %s468_s9  ;;  %p474_p7 = scmp.lt.s32.totalorder %s468_s9, %s468_s9 }
  0x12   :  { %p475_p8 = por %p474_p7, %p473_p6 }
  0x14   :  { %p476_p9 = pnand %p475_p8, %p469_p5 }
  0x16   :  { %479 = shalt.err (!%p476_p9)
}
  0x17   :  { %s550_s10 = smov 128   ;;  %s551_s11 = smov 8  }
  0x18   :  { %27 = dma.hbm_to_vmem [thread:$0]  %s653_s0, 256, %s22_s27, [#allocation3], %s550_s10, %s550_s10, %s551_s11  }
  0x19   :  { %s552_s14 = smov [#allocation7]  }
  0x1a   :  { %s45_s15 = sshll.u32 %s552_s14, 4  ;;  %s46_s15 = int_to_ptr.vmem [resolvable:$true] %s45_s15 }
  0x1b   :  { %s488_s2 = scalar_lea.vmem %s46_s15, 4096  ;;  %p493_p11 = scmp.lt.s32.totalorder %s46_s15, %s46_s15 }
  0x1c   :  { %p489_p10 = scmp.ne.s32.totalorder %s46_s15, %s488_s2  ;;  %p494_p12 = scmp.lt.s32.totalorder %s488_s2, %s488_s2 }
  0x1e   :  { %p495_p13 = por %p494_p12, %p493_p11 }
  0x20   :  { %p496_p0 = pnand %p495_p13, %p489_p10 }
  0x22   :  { %499 = shalt.err (!%p496_p0)
}
  0x23   :  { %s553_s16 = smov 256   ;;  %s554_s17 = smov 16  }
  0x24   :  { %51 = dma.hbm_to_vmem [thread:$0]  %s656_s3, 4096, %s46_s15, [#allocation6], %s553_s16, %s553_s16, %s554_s17  }
  0x25   :  { %s555_s20 = smov [#allocation8]  }
  0x26   :  { %s59_s21 = sshll.u32 %s555_s20, 4  ;;  %s60_s21 = int_to_ptr.vmem [resolvable:$true] %s59_s21 }
  0x27   :  { %s508_s0 = scalar_lea.vmem %s60_s21, 4096  ;;  %p513_p2 = scmp.lt.s32.totalorder %s60_s21, %s60_s21 }
  0x28   :  { %p509_p1 = scmp.ne.s32.totalorder %s60_s21, %s508_s0  ;;  %p514_p3 = scmp.lt.s32.totalorder %s508_s0, %s508_s0 }
  0x2a   :  { %p515_p4 = por %p514_p3, %p513_p2 }
  0x2c   :  { %p516_p5 = pnand %p515_p4, %p509_p1 }
  0x2e   :  { %519 = shalt.err (!%p516_p5)
}
  0x2f   :  { %65 = dma.hbm_to_vmem [thread:$0]  %s658_s5, 4096, %s60_s21, [#allocation9], %s550_s10, %s550_s10, %s551_s11  }
  0x30   :  { %540 = dma.done.wait [#allocation3], 256  }
  0x31   :  { %541 = vsyncadd [#allocation3], 4294967040 }
  0x32   :  { %542 = dma.done.wait [#allocation6], 4112  }
  0x33   :  { %543 = vsyncadd [#allocation6], 4294963184 }
  0x34   :  { %544 = dma.done.wait [#allocation9], 4096  }
  0x35   :  { %545 = vsyncadd [#allocation9], 4294963200  ;;  %v616_v0 = vld [vmem:[#allocation2] sm:$0xff]  ;;  %v619_v1 = vld [vmem:[#allocation2 + $0x8] sm:$0xff]  ;;  %v556_v31 = vmov 0.0   ;;  %s557_s26 = smov [#allocation10]  }
  0x36   :  { %82 = vadd.xlane.f32.xlu0 %v616_v0  ;;  %v154_v2 = vld [vmem:[#allocation7 + $0xf8] sm:$0xff]  ;;  %v153_v3 = vld [vmem:[#allocation7 + $0xf0] sm:$0xff]  ;;  %v152_v4 = vld [vmem:[#allocation7 + $0xe8] sm:$0xff]  ;;  %231 = vmatprep.mubr.f32.mxu0 %v556_v31  ;;  %s371_s27 = sshll.u32 %s557_s26, 4  ;;  %s372_s27 = int_to_ptr.vmem [resolvable:$true] %s371_s27 }
  0x37   :  { %167 = vmatprep.subr.mxu0 %v154_v2  ;;  %v151_v5 = vld [vmem:[#allocation7 + $0xe0] sm:$0xff]  ;;  %v150_v6 = vld [vmem:[#allocation7 + $0xd8] sm:$0xff]  ;;  %v149_v7 = vld [vmem:[#allocation7 + $0xd0] sm:$0xff]  ;;  %s520_s28 = scalar_lea.vmem %s372_s27, 256  ;;  %p525_p7 = scmp.lt.s32.totalorder %s372_s27, %s372_s27 }
  0x38   :  { %168 = vmatpush1.msra.mxu0 %v153_v3  ;;  %v148_v8 = vld [vmem:[#allocation7 + $0xc8] sm:$0xff]  ;;  %v147_v9 = vld [vmem:[#allocation7 + $0xc0] sm:$0xff]  ;;  %v146_v18 = vld [vmem:[#allocation7 + $0xb8] sm:$0xff]  ;;  %p521_p6 = scmp.ne.s32.totalorder %s372_s27, %s520_s28  ;;  %p526_p8 = scmp.lt.s32.totalorder %s520_s28, %s520_s28 }
  0x39   :  { %169 = vmatprep.subr.mxu0 %v152_v4  ;;  %v145_v19 = vld [vmem:[#allocation7 + $0xb0] sm:$0xff]  ;;  %v144_v20 = vld [vmem:[#allocation7 + $0xa8] sm:$0xff]  ;;  %v143_v21 = vld [vmem:[#allocation7 + $0xa0] sm:$0xff] }
  0x3a   :  { %84 = vadd.xlane.f32.xlu0 %v619_v1  ;;  %170 = vmatpush1.msra.mxu0 %v151_v5  ;;  %v142_v22 = vld [vmem:[#allocation7 + $0x98] sm:$0xff]  ;;  %v141_v23 = vld [vmem:[#allocation7 + $0x90] sm:$0xff]  ;;  %v140_v24 = vld [vmem:[#allocation7 + $0x88] sm:$0xff]  ;;  %p527_p9 = por %p526_p8, %p525_p7 }
  0x3b   :  { %171 = vmatprep.subr.mxu0 %v150_v6  ;;  %v139_v25 = vld [vmem:[#allocation7 + $0x80] sm:$0xff]  ;;  %v138_v26 = vld [vmem:[#allocation7 + $0x78] sm:$0xff]  ;;  %v137_v27 = vld [vmem:[#allocation7 + $0x70] sm:$0xff] }
  0x3c   :  { %172 = vmatpush1.msra.mxu0 %v149_v7  ;;  %v136_v28 = vld [vmem:[#allocation7 + $0x68] sm:$0xff]  ;;  %v135_v29 = vld [vmem:[#allocation7 + $0x60] sm:$0xff]  ;;  %v134_v30 = vld [vmem:[#allocation7 + $0x58] sm:$0xff]  ;;  %p528_p10 = pnand %p527_p9, %p521_p6 }
  0x3d   :  { %173 = vmatprep.subr.mxu0 %v148_v8  ;;  %v133_v32 = vld [vmem:[#allocation7 + $0x50] sm:$0xff]  ;;  %v132_v33 = vld [vmem:[#allocation7 + $0x48] sm:$0xff]  ;;  %v131_v34 = vld [vmem:[#allocation7 + $0x40] sm:$0xff] }
  0x3e   :  { %174 = vmatpush1.msra.mxu0 %v147_v9  ;;  %v130_v35 = vld [vmem:[#allocation7 + $0x38] sm:$0xff]  ;;  %v129_v36 = vld [vmem:[#allocation7 + $0x30] sm:$0xff]  ;;  %v128_v37 = vld [vmem:[#allocation7 + $0x28] sm:$0xff] }
  0x3f   :  { %175 = vmatprep.subr.mxu0 %v146_v18  ;;  %v127_v38 = vld [vmem:[#allocation7 + $0x20] sm:$0xff]  ;;  %v126_v39 = vld [vmem:[#allocation7 + $0x18] sm:$0xff]  ;;  %v125_v40 = vld [vmem:[#allocation7 + $0x10] sm:$0xff] }
  0x40   :  { %176 = vmatpush1.msra.mxu0 %v145_v19  ;;  %v124_v41 = vld [vmem:[#allocation7 + $0x8] sm:$0xff]  ;;  %v123_v42 = vld [vmem:[#allocation7] sm:$0xff]  ;;  %v279_v43 = vld [vmem:[#allocation8 + $0xf8] sm:$0xff] }
  0x41   :  { %177 = vmatprep.subr.mxu0 %v144_v20  ;;  %v263_v44 = vld [vmem:[#allocation8 + $0x78] sm:$0xff]  ;;  %v278_v45 = vld [vmem:[#allocation8 + $0xf0] sm:$0xff]  ;;  %388 = vmatprep.subr.mxu1 %v279_v43  ;;  %v277_v47 = vld [vmem:[#allocation8 + $0xe8] sm:$0xff] }
  0x42   :  { %178 = vmatpush1.msra.mxu0 %v143_v21  ;;  %v262_v46 = vld [vmem:[#allocation8 + $0x70] sm:$0xff]  ;;  %389 = vmatpush3.msra.mxu1 %v263_v44  ;;  %v261_v48 = vld [vmem:[#allocation8 + $0x68] sm:$0xff]  ;;  %v276_v49 = vld [vmem:[#allocation8 + $0xe0] sm:$0xff] }
  0x43   :  { %179 = vmatprep.subr.mxu0 %v142_v22  ;;  %390 = vmatprep.subr.mxu1 %v278_v45  ;;  %v260_v50 = vld [vmem:[#allocation8 + $0x60] sm:$0xff]  ;;  %v275_v51 = vld [vmem:[#allocation8 + $0xd8] sm:$0xff]  ;;  %v274_v53 = vld [vmem:[#allocation8 + $0xd0] sm:$0xff] }
  0x44   :  { %180 = vmatpush1.msra.mxu0 %v141_v23  ;;  %391 = vmatpush3.msra.mxu1 %v262_v46  ;;  %v259_v52 = vld [vmem:[#allocation8 + $0x58] sm:$0xff]  ;;  %v258_v54 = vld [vmem:[#allocation8 + $0x50] sm:$0xff]  ;;  %v273_v55 = vld [vmem:[#allocation8 + $0xc8] sm:$0xff] }
  0x45   :  { %181 = vmatprep.subr.mxu0 %v140_v24  ;;  %392 = vmatprep.subr.mxu1 %v277_v47  ;;  %v257_v56 = vld [vmem:[#allocation8 + $0x48] sm:$0xff]  ;;  %v272_v57 = vld [vmem:[#allocation8 + $0xc0] sm:$0xff]  ;;  %v271_v59 = vld [vmem:[#allocation8 + $0xb8] sm:$0xff] }
  0x46   :  { %182 = vmatpush1.msra.mxu0 %v139_v25  ;;  %393 = vmatpush3.msra.mxu1 %v261_v48  ;;  %v256_v58 = vld [vmem:[#allocation8 + $0x40] sm:$0xff]  ;;  %v255_v60 = vld [vmem:[#allocation8 + $0x38] sm:$0xff]  ;;  %v270_v61 = vld [vmem:[#allocation8 + $0xb0] sm:$0xff] }
  0x47   :  { %183 = vmatprep.subr.mxu0 %v138_v26  ;;  %394 = vmatprep.subr.mxu1 %v276_v49  ;;  %v254_v62 = vld [vmem:[#allocation8 + $0x30] sm:$0xff]  ;;  %v269_v63 = vld [vmem:[#allocation8 + $0xa8] sm:$0xff]  ;;  %v268_v3 = vld [vmem:[#allocation8 + $0xa0] sm:$0xff] }
  0x48   :  { %184 = vmatpush1.msra.mxu0 %v137_v27  ;;  %395 = vmatpush3.msra.mxu1 %v260_v50  ;;  %v253_v2 = vld [vmem:[#allocation8 + $0x28] sm:$0xff]  ;;  %v252_v4 = vld [vmem:[#allocation8 + $0x20] sm:$0xff]  ;;  %v267_v23 = vld [vmem:[#allocation8 + $0x98] sm:$0xff] }
  0x49   :  { %185 = vmatprep.subr.mxu0 %v136_v28  ;;  %396 = vmatprep.subr.mxu1 %v275_v51  ;;  %v251_v24 = vld [vmem:[#allocation8 + $0x18] sm:$0xff]  ;;  %v266_v25 = vld [vmem:[#allocation8 + $0x90] sm:$0xff]  ;;  %v249_v27 = vld [vmem:[#allocation8 + $0x8] sm:$0xff] }
  0x4a   :  { %186 = vmatpush1.msra.mxu0 %v135_v29  ;;  %397 = vmatpush3.msra.mxu1 %v259_v52  ;;  %v250_v26 = vld [vmem:[#allocation8 + $0x10] sm:$0xff]  ;;  %v264_v28 = vld [vmem:[#allocation8 + $0x80] sm:$0xff]  ;;  %v157_v29 = vlaneseq  ;;  %v387_v49 = vld [vmem:[%s659_s6] ss:$0 sm:$0xff] }
  0x4b   :  { %187 = vmatprep.subr.mxu0 %v134_v30  ;;  %398 = vmatprep.subr.mxu1 %v274_v53 }
  0x4c   :  { %188 = vmatpush1.msra.mxu0 %v133_v32  ;;  %399 = vmatpush3.msra.mxu1 %v258_v54  ;;  %v158_v30 = vshrl.u32 %v157_v29, 7  ;;  %v155_v32 = vld [vmem:[%s657_s4] sm:$0x3] }
  0x4d   :  { %189 = vmatprep.subr.mxu0 %v132_v33  ;;  %400 = vmatprep.subr.mxu1 %v273_v55 }
  0x4e   :  { %190 = vmatpush1.msra.mxu0 %v131_v34  ;;  %401 = vmatpush3.msra.mxu1 %v257_v56  ;;  %v163_v33 = vsub.s32 1, %v158_v30 }
  0x4f   :  { %191 = vmatprep.subr.mxu0 %v130_v35  ;;  %402 = vmatprep.subr.mxu1 %v272_v57 }
  0x50   :  { %192 = vmatpush1.msra.mxu0 %v129_v36  ;;  %403 = vmatpush3.msra.mxu1 %v256_v58  ;;  %v164_v35 = vrot.slane %v155_v32, %v163_v33 }
  0x51   :  { %193 = vmatprep.subr.mxu0 %v128_v37  ;;  %404 = vmatprep.subr.mxu1 %v271_v59 }
  0x52   :  { %194 = vmatpush1.msra.mxu0 %v127_v38  ;;  %405 = vmatpush3.msra.mxu1 %v255_v60 }
  0x53   :  { %195 = vmatprep.subr.mxu0 %v126_v39  ;;  %406 = vmatprep.subr.mxu1 %v270_v61 }
  0x54   :  { %196 = vmatpush1.msra.mxu0 %v125_v40  ;;  %407 = vmatpush3.msra.mxu1 %v254_v62 }
  0x55   :  { %197 = vmatprep.subr.mxu0 %v124_v41  ;;  %408 = vmatprep.subr.mxu1 %v269_v63 }
  0x56   :  { %198 = vmatpush1.msra.mxu0 %v123_v42  ;;  %409 = vmatpush3.msra.mxu1 %v253_v2 }
  0x57   :  { %410 = vmatprep.subr.mxu1 %v268_v3 }
  0x58   :  { %411 = vmatpush3.msra.mxu1 %v252_v4 }
  0x59   :  { %412 = vmatprep.subr.mxu1 %v267_v23 }
  0x5a   :  { %413 = vmatpush3.msra.mxu1 %v251_v24 }
  0x5b   :  { %414 = vmatprep.subr.mxu1 %v266_v25 }
  0x5c   :  { %415 = vmatpush3.msra.mxu1 %v250_v26 }
  0xbf   :  { %v83_v10 = vpop.xlane.xlu0 %82 }
  0xc0   :  { %v87_v11 = vmul.f32 0.0078125, %v83_v10 }
  0xc2   :  { %v623_v12 = vsub.f32 %v616_v0, %v87_v11 }
  0xc3   :  { %v85_v13 = vpop.xlane.xlu0 %84 }
  0xc4   :  { %v88_v14 = vmul.f32 0.0078125, %v85_v13  ;;  %v91_v15 = vmul.f32 %v623_v12, %v623_v12  ;;  %v385_v13 = vld [vmem:[%s654_s1] ss:$0 sm:$0xff] }
  0xc6   :  { %v628_v16 = vsub.f32 %v619_v1, %v88_v14  ;;  %93 = vadd.xlane.f32.xlu1 %v91_v15  ;;  %v386_v15 = vld [vmem:[#allocation5] ss:$0 sm:$0xff] }
  0xc8   :  { %v92_v17 = vmul.f32 %v628_v16, %v628_v16 }
  0xca   :  { %95 = vadd.xlane.f32.xlu1 %v92_v17 }
 0x14f   :  { %v94_v5 = vpop.xlane.xlu1 %93 }
 0x150   :  { %v97_v6 = vmul.f32 0.0078125, %v94_v5 }
 0x152   :  { %v99_v7 = vadd.f32 1e-06, %v97_v6 }
 0x153   :  { %v96_v8 = vpop.xlane.xlu1 %95 }
 0x154   :  { %436 = vrsqrt.f32 %v99_v7  ;;  %v98_v9 = vmul.f32 0.0078125, %v96_v8 }
 0x156   :  { %v100_v10 = vadd.f32 1e-06, %v98_v9 }
 0x158   :  { %438 = vrsqrt.f32 %v100_v10 }
 0x161   :  { %v437_v11 = vpop.eup %436 }
 0x162   :  { %v103_v14 = vmul.f32 %v437_v11, %v623_v12  ;;  %v265_v12 = vld [vmem:[#allocation8 + $0x88] sm:$0xff] }
 0x163   :  { %416 = vmatprep.subr.mxu1 %v265_v12 }
 0x164   :  { %v112_v17 = vmul.f32 %v385_v13, %v103_v14  ;;  %417 = vmatpush3.msra.mxu1 %v249_v27 }
 0x165   :  { %v439_v18 = vpop.eup %438  ;;  %418 = vmatprep.subr.mxu1 %v264_v28 }
 0x166   :  { %v121_v19 = vadd.f32 %v386_v15, %v112_v17  ;;  %v104_v20 = vmul.f32 %v439_v18, %v628_v16  ;;  %v248_v16 = vld [vmem:[#allocation8] sm:$0xff] }
 0x167   :  { %419 = vmatpush3.msra.mxu1 %v248_v16 }
 0x168   :  { %232 = vmatmul.mubr.f32.vlgmr.msra.gmra.mxu0 %v121_v19  ;;  %v113_v21 = vmul.f32 %v385_v13, %v104_v20 }
 0x169   :  { %237 = vmatprep.mubr.f32.mxu0 %v556_v31  ;;  %v159_v31 = vsub.s32 0, %v158_v30 }
 0x16a   :  { %v122_v22 = vadd.f32 %v386_v15, %v113_v21 }
 0x16b   :  { %v160_v34 = vrot.slane %v155_v32, %v159_v31 }
 0x16c   :  { %238 = vmatmul.mubr.f32.gmra.mxu0 %v122_v22 }
 0x228   :  { %v233_v36 = vpop.f32.mrf.mxu0 }
 0x229   :  { %v234_v37 = vadd.f32 %v233_v36, %v160_v34 }
 0x22a   :  { %v235_v38 = vpop.f32.mrf.mxu0 }
 0x22b   :  { %v236_v39 = vadd.f32 %v235_v38, %v164_v35  ;;  %v244_v42 = vmax.f32 %v234_v37, 0.0 }
 0x22c   :  { %v239_v40 = vpop.f32.mrf.mxu0 }
 0x22d   :  { %v245_v41 = vmax.f32 %v236_v39, 0.0  ;;  %v240_v43 = vadd.f32 %v239_v40, %v160_v34 }
 0x22e   :  { %v241_v44 = vpop.f32.mrf.mxu0 }
 0x22f   :  { %v242_v45 = vadd.f32 %v241_v44, %v164_v35  ;;  %351 = vmatprep.mubr.f32.mxu1 %v245_v41  ;;  %v246_v47 = vmax.f32 %v240_v43, 0.0 }
 0x230   :  { %352 = vmatmul.mubr.f32.vlgmr.msra.gmra.mxu1 %v244_v42 }
 0x231   :  { %v247_v46 = vmax.f32 %v242_v45, 0.0 }
 0x233   :  { %356 = vmatprep.mubr.f32.mxu1 %v247_v46 }
 0x234   :  { %357 = vmatmul.mubr.f32.gmra.mxu1 %v246_v47 }
 0x2f0   :  { %v420_v48 = vpop.f32.mrf.mxu1 }
 0x2f2   :  { %v421_v50 = vpop.f32.mrf.mxu1 }
 0x2f3   :  { %v422_v51 = vadd.f32 %v421_v50, %v420_v48 }
 0x2f4   :  { %v423_v52 = vpop.f32.mrf.mxu1 }
 0x2f5   :  { %v354_v53 = vadd.f32 %v422_v51, %v387_v49 }
 0x2f6   :  { %v424_v54 = vpop.f32.mrf.mxu1 }
 0x2f7   :  { %v362_v55 = vadd.f32 %v354_v53, %v616_v0  ;;  %v425_v56 = vadd.f32 %v424_v54, %v423_v52 }
 0x2f9   :  { %364 = vst [vmem:[#allocation10] sm:$0xff] %v362_v55  ;;  %v359_v57 = vadd.f32 %v425_v56, %v387_v49 }
 0x2fb   :  { %v363_v58 = vadd.f32 %v359_v57, %v619_v1 }
 0x2fd   :  { %365 = vst [vmem:[#allocation10 + $0x8] sm:$0xff] %v363_v58 }
 0x2fe   :  { %531 = shalt.err (!%p528_p10)
}
 0x2ff   :  { %377 = dma.vmem_to_hbm [thread:$0]  %s372_s27, 256, %s660_s7, [#allocation4], %s550_s10, %s550_s10, %s551_s11  }
 0x300   :  { %546 = dma.done.wait [#allocation4], 256  }
 0x301   :  { %547 = vsyncadd [#allocation4], 4294967040 }
 0x302   :  { %381 = vsyncpa [#allocation3], 1 }
 0x303   :  { %382 = vsyncpa [#allocation6], 1 }
 0x304   :  { %383 = vsyncpa [#allocation9], 1 }
 0x305   :  { %384 = vsyncpa [#allocation4], 1 }

</bundles_post_ra>
